<compile_context>
chip_gen: v7x
topology: tpu7x:2x2x1
jax: 0.10.0
libtpu: 0.0.40
codegen_flags: <defaults>
</compile_context>

<pallas_src>
import functools

import jax
import jax.numpy as jnp
from jax.experimental import pallas as pl
from jax.experimental.pallas import tpu as pltpu


# ---------------------------------------------------------------------------
# Kernels
# ---------------------------------------------------------------------------
def _tile_copy_kernel(x_ref, o_ref):
    # Pure DMA re-indexing: the permutation of the leading dims is expressed
    # entirely in the BlockSpec index_maps, so the body is an identity copy.
    o_ref[...] = x_ref[...]


def _tile_transpose_kernel(x_ref, o_ref):
    # x_ref: (TC, TR) tile  ->  o_ref: (TR, TC) tile (2-D XLU transpose).
    o_ref[...] = x_ref[...].T


def _whole_array_permute_kernel(x_ref, o_ref, *, perm):
    # Fallback: whole (small) array permuted in VMEM.
    o_ref[...] = jnp.transpose(x_ref[...], perm)


# ---------------------------------------------------------------------------
# Tiling helpers
# ---------------------------------------------------------------------------
def _sublane_multiple(dtype):
    itemsize = jnp.dtype(dtype).itemsize
    return max(8, 32 // itemsize)   # 8 f32, 16 bf16, 32 int8


def _pick_tile(dim, align, preferred):
    """Largest multiple of `align` that divides `dim` and is <= `preferred`.
    Falls back to the full extent when `dim` is not a multiple of `align`
    (full-extent blocks always satisfy the (8,128) constraint)."""
    if dim % align != 0:
        return dim
    best = align
    t = align
    limit = min(preferred, dim)
    while t <= limit:
        if dim % t == 0:
            best = t
        t += align
    return best


# ---------------------------------------------------------------------------
# Tiled path: last two input axes stay as the last two output axes
# (possibly swapped); leading axes may be reordered arbitrarily.
# ---------------------------------------------------------------------------
def _tiled_trailing_permute(x, perm):
    n = x.ndim
    a, b = perm[-2], perm[-1]          # input dims feeding output's last 2 dims
    swap = a > b                       # True -> the last two axes are swapped
    inv_perm = [0] * n
    for out_pos, in_dim in enumerate(perm):
        inv_perm[in_dim] = out_pos

    out_shape = tuple(x.shape[p] for p in perm)
    R, C = out_shape[-2], out_shape[-1]
    itemsize = jnp.dtype(x.dtype).itemsize

    # Tile-size selection: lane-dense output (last dim mult of 128), aligned
    # sublane dim; when swapped, each tile dim is a lane dim on one side so
    # both must be multiples of 128 (or full extent).
    if swap:
        align_r = align_c = 128
    else:
        align_r = _sublane_multiple(x.dtype)
        align_c = 128

    preferred = 512                    # ~1 MiB f32 tiles; v7x-safe footprint
    while True:
        TR = _pick_tile(R, align_r, preferred)
        TC = _pick_tile(C, align_c, preferred)
        tile_bytes = 2 * TR * TC * itemsize          # one in-tile + one out-tile
        if tile_bytes <= (8 << 20) or preferred <= 128:
            break
        preferred //= 2

    grid = tuple(out_shape[:-2]) + (R // TR, C // TC)

    # Output: identity block indexing, (TR, TC) tiles, leading dims squeezed.
    out_block = (pl.Squeezed(),) * (n - 2) + (TR, TC)
    out_spec = pl.BlockSpec(out_block, lambda *idx: idx)

    # Input: block sizes / indices permuted according to `perm`.
    in_block = []
    for d in range(n):
        if d == a:
            in_block.append(TR)
        elif d == b:
            in_block.append(TC)
        else:
            in_block.append(pl.Squeezed())

    def in_index_map(*idx):
        res = []
        for d in range(n):
            if d == a:
                res.append(idx[n - 2])          # output row-tile index
            elif d == b:
                res.append(idx[n - 1])          # output col-tile index
            else:
                res.append(idx[inv_perm[d]])    # reordered leading dim
        return tuple(res)

    kernel = _tile_transpose_kernel if swap else _tile_copy_kernel

    # Explicit, generation-safe VMEM budget (double-buffered in + out tiles).
    vmem_limit = int(min(max(4 * TR * TC * itemsize + (2 << 20), 8 << 20),
                         48 << 20))

    return pl.pallas_call(
        kernel,
        out_shape=jax.ShapeDtypeStruct(out_shape, x.dtype),
        grid_spec=pltpu.PrefetchScalarGridSpec(
            num_scalar_prefetch=0,
            grid=grid,
            in_specs=[pl.BlockSpec(tuple(in_block), in_index_map)],
            out_specs=out_spec,
        ),
        compiler_params=pltpu.CompilerParams(
            dimension_semantics=("parallel",) * len(grid),
            vmem_limit_bytes=vmem_limit,
        ),
    )(x)


# ---------------------------------------------------------------------------
# General path: arbitrary permutation (output lane axis comes from a
# non-trailing input axis).  Small arrays only; explicit VMEM limit.
# ---------------------------------------------------------------------------
def _whole_array_permute(x, perm):
    out_shape = tuple(x.shape[p] for p in perm)
    nbytes = x.size * jnp.dtype(x.dtype).itemsize
    if 2 * nbytes > (8 << 20):
        # TODO(synk): tiled Pallas path for large fully-general permutes
        # (lane-axis moves); fall back to XLA's transpose for now.
        return jnp.transpose(x, perm)
    return pl.pallas_call(
        functools.partial(_whole_array_permute_kernel, perm=perm),
        out_shape=jax.ShapeDtypeStruct(out_shape, x.dtype),
        in_specs=[pl.BlockSpec(memory_space=pltpu.MemorySpace.VMEM)],
        out_specs=pl.BlockSpec(memory_space=pltpu.MemorySpace.VMEM),
        compiler_params=pltpu.CompilerParams(vmem_limit_bytes=32 << 20),
    )(x)


# ---------------------------------------------------------------------------
# Wrapper (equivalent of Permute(*args).forward)
# ---------------------------------------------------------------------------
def permute_pallas(x, perm):
    """Pallas-backed equivalent of `x.permute(perm)` (PyTorch semantics)."""
    perm = tuple(int(p) for p in perm)
    assert sorted(perm) == list(range(x.ndim)), "perm must be a permutation"

    if perm == tuple(range(x.ndim)):
        return x                                    # identity (view in PyTorch)

    if x.ndim >= 2 and {perm[-2], perm[-1]} == {x.ndim - 2, x.ndim - 1}:
        return _tiled_trailing_permute(x, perm)

    return _whole_array_permute(x, perm)


class Permute:
    """Drop-in analogue of the PyTorch nn.Module (no parameters)."""

    def __init__(self, *args):
        self.args = tuple(args)

    def __call__(self, x):
        return permute_pallas(x, self.args)


# ---------------------------------------------------------------------------
# Demo / self-check
# ---------------------------------------------------------------------------
if __name__ == "__main__":
    key = jax.random.PRNGKey(0)
    k1, k2, k3, k4, k5 = jax.random.split(key, 5)

    # 1) Canonical ar_dur usage: Permute(0, 2, 1) on a small (B, C, T) tensor.
    x = jax.random.normal(k1, (2, 4, 16), dtype=jnp.float32)
    y = jax.block_until_ready(Permute(0, 2, 1)(x))
    assert y.shape == (2, 16, 4), y.shape
    assert jnp.array_equal(y, jnp.transpose(x, (0, 2, 1))), "swap path mismatch"

    # 2) Same permute at tile-aligned sizes (exercises the 128-aligned tiling).
    xa = jax.random.normal(k2, (2, 256, 384), dtype=jnp.float32)
    ya = jax.block_until_ready(Permute(0, 2, 1)(xa))
    assert jnp.array_equal(ya, jnp.transpose(xa, (0, 2, 1))), "tiled swap mismatch"

    # 3) bf16 (packed dtype) swap at aligned sizes.
    xb = jax.random.normal(k3, (2, 128, 256), dtype=jnp.bfloat16)
    yb = jax.block_until_ready(Permute(0, 2, 1)(xb))
    assert jnp.array_equal(yb, jnp.transpose(xb, (0, 2, 1))), "bf16 swap mismatch"

    # 4) Leading-dim reorder (last two axes untouched) -> pure-DMA copy path.
    xc = jax.random.normal(k4, (2, 3, 8, 128), dtype=jnp.float32)
    yc = jax.block_until_ready(Permute(1, 0, 2, 3)(xc))
    assert jnp.array_equal(yc, jnp.transpose(xc, (1, 0, 2, 3))), "copy path mismatch"

    # 5) Fully general permutation -> guarded whole-array VMEM path.
    xd = jax.random.normal(k5, (2, 4, 8, 16), dtype=jnp.float32)
    yd = jax.block_until_ready(Permute(3, 1, 0, 2)(xd))
    assert yd.shape == (16, 4, 2, 8), yd.shape
    assert jnp.array_equal(yd, jnp.transpose(xd, (3, 1, 0, 2))), "general mismatch"

    print("KERNEL_OK")
</pallas_src>

<mosaic_0001>
module attributes {stable_mosaic.version = 11 : i64} {
  func.func @_tile_transpose_kernel(%arg0: i32, %arg1: i32, %arg2: i32, %arg3: memref<1x4x16xf32, #tpu.memory_space<vmem>>, %arg4: memref<1x16x4xf32, #tpu.memory_space<vmem>>) attributes {dimension_semantics = [#tpu.dimension_semantics<parallel>, #tpu.dimension_semantics<parallel>, #tpu.dimension_semantics<parallel>], iteration_bounds = array<i64: 2, 1, 1>, scalar_prefetch = 0 : i64, scratch_operands = 0 : i64, tpu.core_type = #tpu.core_type<tc>, window_params = [{transform_indices = @transform_0, window_bounds = array<i64: 1, 4, 16>}, {transform_indices = @transform_1, window_bounds = array<i64: 1, 16, 4>}]} {
    %c0 = arith.constant 0 : index
    %c0_0 = arith.constant 0 : index
    %c0_1 = arith.constant 0 : index
    %0 = vector.load %arg3[%c0, %c0_0, %c0_1] : memref<1x4x16xf32, #tpu.memory_space<vmem>>, vector<1x4x16xf32>
    %1 = vector.shape_cast %0 : vector<1x4x16xf32> to vector<4x16xf32>
    %2 = tpu.transpose %1, [1, 0] : vector<4x16xf32> -> vector<16x4xf32>
    %c0_2 = arith.constant 0 : index
    %c0_3 = arith.constant 0 : index
    %c0_4 = arith.constant 0 : index
    %3 = vector.load %arg4[%c0_2, %c0_3, %c0_4] : memref<1x16x4xf32, #tpu.memory_space<vmem>>, vector<1x16x4xf32>
    %4 = vector.shape_cast %3 : vector<1x16x4xf32> to vector<16x4xf32>
    %5 = vector.shape_cast %2 : vector<16x4xf32> to vector<1x16x4xf32>
    tpu.vector_store %arg4[%c0_2, %c0_3, %c0_4], %5 {strides = array<i32>} : memref<1x16x4xf32, #tpu.memory_space<vmem>>, vector<1x16x4xf32>,
    return
  }
  func.func @transform_0(%arg0: i32, %arg1: i32, %arg2: i32) -> (i32, i32, i32) {
    %c0_i32 = arith.constant 0 : i32
    return %arg0, %arg2, %arg1 : i32, i32, i32
  }
  func.func @transform_1(%arg0: i32, %arg1: i32, %arg2: i32) -> (i32, i32, i32) {
    %c0_i32 = arith.constant 0 : i32
    return %arg0, %arg1, %arg2 : i32, i32, i32
  }
}

</mosaic_0001>

<bundles_post_ra>
// kernel: tpu_custom_call.1
= control target key start
LH: loop header
LB: loop body
LE: loop exit
PB: predicated region body
PF: predicated region fallthrough
CT: control target
= control target key end

     0   :  { %6 = vsyncpa [#allocation3], 0  ;;  %s608_s0 = inlined_call_operand.hbm [shape: f32[2,4,16], index: 0, kind: input, shape index: {}]   ;;  %s609_s1 = inlined_call_operand.vmem [shape: f32[2,16,4], index: 1, kind: output, shape index: {}]  }
   0x1   :  { %8 = vsyncpa [#allocation3 + $0x1], 0  ;;  %s483_s6 = smov 0   ;;  %s485_s7 = smov 0  }
   0x2   :  { %s487_s8 = smov 0   ;;  %s489_s9 = smov 0  }
   0x3   :  { %s491_s10 = smov 0   ;;  %s493_s11 = smov 0  }
   0x4 LB: > { %s321_s12 = sadd.s32 4294967295, %s470_s11   ;;  %s33_s13 = sadd.s32 1, %s466_s10  ;;  %s470_s11 = sphi %s493_s11, %s14_s11   ;;  %s466_s10 = sphi %s491_s10, %s619_s10   ;;  %s462_s9 = sphi %s489_s9, %s618_s9   ;;  %s458_s8 = sphi %s487_s8, %s617_s8   ;;  %s454_s7 = sphi %s485_s7, %s616_s7   ;;  %s450_s6 = sphi %s483_s6, %s615_s6  }
   0x5   : > { %p35_p0 = scmp.ge.s32.totalorder %s33_s13, 2  ;;  %s44_s14 = sadd.s32 1, %s458_s8 }
   0x6   : > { %p51_p1 = scmp.ne.s32.totalorder %s458_s8, %s454_s7  ;;  %p52_p2 = scmp.eq.s32.totalorder %s470_s11, 0 }
   0x7   : > { %s621_s13 = smov (%p35_p0, %s33_s13), 0  ;;  %p57_p4 = scmp.ne.s32.totalorder %s454_s7, %s450_s6 }
   0x8   : > { %p519_p3 = por %p52_p2, %p51_p1  ;;  %s37_s16 = ssub.s32 %s466_s10, %s621_s13 }
   0x9   : > { %p58_p5 = scmp.eq.s32.totalorder %s321_s12, 0  ;;  %p42_p6 = scmp.eq.s32.totalorder %s37_s16, 0 }
   0xa   : > { %p340_p8 = scmp.lt.s32.totalorder %s470_s11, 2  ;;  %s111_s19 = sand.u32 1, %s458_s8  }
   0xb   : > { %p526_p7 = por %p58_p5, %p57_p4  ;;  %s326_s20 = sshll.u32 %s466_s10, 6 }
   0xc   : > { %s532_s18 = scalar_select %p42_p6, %s458_s8, %s44_s14  }
   0xd   : > { %s325_s21 = sshll.u32 %s111_s19, 2  ;;  %s539_s24 = scalar_lea.hbm %s608_s0, %s326_s20 }
   0xe   : > { %s115_s25 = scalar_lea.vmem [#allocation2], %s325_s21  ;;  %p543_p9 = pnand %p340_p8, %p519_p3 }
   0xf   : > { %s124_s26 = sshll.u32 %s115_s25, 4  ;;  %s112_s28 = scalar_lea.sflag [#allocation3], %s111_s19  ;;  %s547_s26 = int_to_ptr.vmem [resolvable:$true] %s124_s26 }
  0x10   : > { %s390_s29 = scalar_lea.hbm %s539_s24, 64  ;;  %p392_p13 = pneg %p543_p9 }
  0x11   : > { %p391_p12 = scmp.ne.s32.totalorder %s539_s24, %s390_s29  ;;  %s395_s3 = scalar_lea.hbm %s608_s0, 128 }
  0x12   : > { %p396_p2 = scmp.lt.u32.totalorder %s539_s24, %s608_s0  ;;  %p397_p3 = scmp.lt.u32.totalorder %s395_s3, %s390_s29 }
  0x13   : > { %p393_p0 = pnand %p392_p13, %p391_p12  ;;  %p399_p5 = scmp.lt.u32.totalorder %s390_s29, %s539_s24 }
  0x14   : > { %p398_p4 = por %p397_p3, %p396_p2 }
  0x15   : > { %p394_p1 = pneg %p393_p0 }
  0x16   : > { %p400_p6 = por %p399_p5, %p398_p4 }
  0x18   : > { %p401_p8 = pnand %p400_p6, %p394_p1 }
  0x1a   : > { %404 = shalt.err (!%p401_p8)
}
  0x1b   : > { %s405_s6 = scalar_lea.vmem %s547_s26, 64  ;;  %s472_s12 = smov [#allocation2]  }
  0x1c   : > { %p406_p12 = scmp.ne.s32.totalorder %s547_s26, %s405_s6  ;;  %s410_s14 = sshll.u32 %s472_s12, 4  ;;  %s411_s14 = int_to_ptr.vmem [resolvable:$false] %s410_s14 }
  0x1d   : > { %s412_s15 = scalar_lea.vmem %s411_s14, 128  ;;  %p413_p11 = scmp.lt.s32.totalorder %s547_s26, %s411_s14 }
  0x1e   : > { %p408_p0 = pnand %p406_p12, %p392_p13  ;;  %p414_p2 = scmp.lt.s32.totalorder %s412_s15, %s405_s6 }
  0x20   : > { %p409_p10 = pneg %p408_p0  ;;  %p415_p3 = por %p414_p2, %p413_p11 }
  0x22   : > { %p416_p4 = pnand %p415_p3, %p409_p10 }
  0x24   : > { %419 = shalt.err (!%p416_p4)
}
  0x25   : > { %339 = dma.hbm_to_vmem [thread:$0]  (!%p543_p9), %s539_s24, 64, %s547_s26, %s112_s28  }
  0x26   : > { %p613_p1 = scmp.lt.s32.totalorder %s470_s11, 3  ;;  %p614_p5 = scmp.ge.s32.totalorder %s470_s11, 1 }
  0x28   : > { %p130_p13 = pnand %p614_p5, %p613_p1 }
  0x29   : > { %s135_s16 = sand.u32 (!%p130_p13), 1, %s454_s7  }
  0x2a   : > { %133 = sbr.rel (%p130_p13) target bundleno = 185 (0xb9), region = 24  ;;  %s328_s19 = sshll.u32 (!%p130_p13), %s135_s16, 2 }
  0x2b   : > { %s136_s20 = scalar_lea.sflag (!%p130_p13), [#allocation3], %s135_s16  ;;  %s139_s21 = scalar_lea.vmem (!%p130_p13), [#allocation2], %s328_s19 }
  0x31   : > { %445 = dma.done.wait (%p526_p7), %s136_s20, 64  }
  0x32   : > { %447 = vsyncadd (%p526_p7), %s136_s20, 4294967232  ;;  %v178_v0 = vld [vmem:[%s139_s21] sm:$0xf]  ;;  %p166_p9 = scmp.lt.s32.totalorder %s462_s9, 1  ;;  %vm211_vm0 = vcmask 31744  }
  0x33   : > { %179 = vxpose.xlu0.b32.start.end [1/1] (short) (narrow) %v178_v0, 16 }
  0x34   : > { %s623_s9 = smov (!%p166_p9, %s462_s9), 1 }
  0x35   : > { %s333_s22 = sshll.u32 %s623_s9, 4 }
  0x36   : > { %s176_s25 = scalar_lea.vmem %s609_s1, %s333_s22 }
  0xb3   : > { %v195_v1 = vpop.trf.xlu0 }
  0xb4   : > { %212 = vst.msk [vmem:[%s176_s25] sm:$0xff] %vm211_vm0, %v195_v1 }
  0xb7   : > { %v196_v2 = vpop.trf.xlu0 }
  0xb8   : > { %213 = vst.msk [vmem:[%s176_s25 + $0x8] sm:$0xff] %vm211_vm0, %v196_v2 }
  0xb9 PF: > { %s14_s11 = sadd.s32 1, %s470_s11   ;;  %s615_s6 = smov %s454_s7 }
  0xba   : > { %p11_p7 = scmp.ge.s32.totalorder %s14_s11, 4   ;;  %s616_s7 = smov %s458_s8 }
  0xbb   : > { %s617_s8 = smov %s532_s18  ;;  %s618_s9 = smov %s466_s10 }
  0xbc   : > { %s619_s10 = smov %s621_s13  ;;  %13 = sbr.rel (!%p11_p7) target bundleno = 4 (0x4), region = 64 }
  0xc3   :  { %250 = vsyncpa [#allocation3], 1 }
  0xc4   :  { %252 = vsyncpa [#allocation3 + $0x1], 1 }

</bundles_post_ra>
